<compile_context>
chip_gen: v6e
topology: v6e:2x2x1
jax: 0.10.0
libtpu: 0.0.40
codegen_flags: <defaults>
</compile_context>

<pallas_src>
import functools

import numpy as np
import jax
import jax.numpy as jnp
from jax.experimental import pallas as pl
from jax.experimental.pallas import tpu as pltpu

_LANES = 128
_TILE_R_MAX = 4096        # (4096, 128) f32 block = 2 MiB per buffer
_MIN_KERNEL_ROWS = 256    # below this a fused jnp elementwise op is faster


def _dimension_semantics():
    """Row-tile axis semantics: CORE_PARALLEL on v7x (2 TCs/chip), else 'parallel'."""
    try:
        kind = jax.devices()[0].device_kind.lower()
    except Exception:
        kind = ""
    if ("v7" in kind or "7x" in kind) and hasattr(pltpu, "CORE_PARALLEL"):
        return (pltpu.CORE_PARALLEL,)
    return ("parallel",)


def _to_interleaved_f32(x):
    """complex64 -> (..., 2) float32 interleaved (re, im)."""
    try:
        return jax.lax.bitcast_convert_type(x, jnp.float32)      # zero-copy view
    except Exception:
        # bitcast_convert_type rejects complex on this JAX/XLA version; build the
        # interleaved layout explicitly (fuses to a single pass under jit).
        return jnp.stack([jnp.real(x), jnp.imag(x)], axis=-1)


def _from_interleaved_f32(y):
    """(..., 2) float32 interleaved (re, im) -> complex64."""
    try:
        return jax.lax.bitcast_convert_type(y, jnp.complex64)
    except Exception:
        return jax.lax.complex(y[..., 0], y[..., 1])


def _pick_tile(r_full, two_c, pow2_path):
    """Largest legal row tile that divides r_full exactly (no pad, no slice)."""
    if r_full <= _TILE_R_MAX:
        return r_full                    # single block == full array: always legal
    start = _TILE_R_MAX - (_TILE_R_MAX % 8)
    for t in range(start, 0, -8):        # block rows must be a multiple of 8
        if r_full % t:
            continue
        if not pow2_path and (t * _LANES) % two_c:
            continue                     # f32 path needs whole pixels per tile
        return t
    return None


def _make_kernel(n, two_c, tile_r, umax, step_f, ap2, pow2_path):
    """Kernel body with the (static) pupil config baked in.

    Operates on lane-dense (tile_r, 128) f32 slabs of the row-major flattened
    interleaved payload: flat index f = pixel * 2C + channel, pixel = i*n + j.
    """
    n_i, two_c_i = int(n), int(two_c)
    block_elems = tile_r * _LANES
    umax_f = np.float32(umax)
    step32 = np.float32(step_f)
    ap2_f = np.float32(ap2)
    n_f = np.float32(n_i)
    two_c_f = np.float32(two_c_i)
    if pow2_path:
        sh_c = two_c_i.bit_length() - 1
        sh_n = n_i.bit_length() - 1
    else:
        pix_per_block = block_elems // two_c_i    # exact by tile construction

    def kernel(x_ref, o_ref):
        row = jax.lax.broadcasted_iota(jnp.int32, (tile_r, _LANES), 0)
        lane = jax.lax.broadcasted_iota(jnp.int32, (tile_r, _LANES), 1)
        f_local = row * _LANES + lane                      # < tile_r*128 <= 2**19
        if pow2_path:
            # Exact int32 shift/AND index math: no divisions, converts only for
            # the final i/j values.
            f = f_local + pl.program_id(0) * block_elems   # absolute flat index
            p = f >> sh_c                                  # pixel index < n*n
            i_f = (p >> sh_n).astype(jnp.float32)          # mesh row
            j_f = (p & (n_i - 1)).astype(jnp.float32)      # mesh col
        else:
            # Per-tile base pixel is a scalar multiply (tiles hold whole pixels);
            # the vector math only sees values < 2**20, exact in f32.
            base_pix = (pl.program_id(0) * pix_per_block).astype(jnp.float32)
            q = jnp.floor(f_local.astype(jnp.float32) / two_c_f)
            p = base_pix + q                               # pixel index < n*n
            i_f = jnp.floor(p / n_f)
            j_f = p - i_f * n_f
        # u_vec = arange(-umax, umax, step); ux = u_vec[j], uy = u_vec[i] (the
        # module returns -uy; the sign is dead since uy is squared).  Pixels with
        # ur**2 within an ulp of aperture**2 may differ from torch when step has
        # binary representation error (not the case for the default 4/128 step).
        ux = j_f * step32 - umax_f
        uy = i_f * step32 - umax_f
        keep = ux * ux + uy * uy <= ap2_f                  # get_aperture mask
        o_ref[...] = jnp.where(keep, x_ref[...], 0.0)

    return kernel


def _fallback_forward(x, n, aperture_size, step_f, umax):
    """Fused jnp path for tiny payloads / layouts the kernel does not cover."""
    u_vec = jnp.arange(-umax, umax, step_f, dtype=jnp.float32)
    ux, uy = jnp.meshgrid(u_vec, u_vec, indexing="xy")
    keep = (ux * ux + uy * uy) <= np.float32(aperture_size) ** 2
    keep = keep.reshape((n, n) + (1,) * (x.ndim - 2))
    return jnp.expand_dims(jnp.where(keep, x, 0), axis=-3)


@functools.partial(jax.jit, static_argnums=(1, 2, 3, 4))
def pupil_diversity_forward(x, aperture_size=1.0, computation_size=4.0,
                            N_pts=128, umax=1.0):
    """Pallas implementation of torchPupilDiversity(...)(x).

    x: complex of shape (n, n, *rest) with len(rest) >= 2, where
       n = len(arange(-umax, umax, computation_size / N_pts)).
    Returns complex64 of shape (n, n, *rest[:-2], 1, rest[-2], rest[-1]).
    """
    step_f = computation_size / N_pts
    # Same length rule as torch/np/jnp arange (off-by-one parity risk for steps
    # with binary representation error is caught by the shape assert below).
    n = int(np.arange(-umax, umax, step_f).shape[0])

    assert x.ndim >= 4, "forward() assumes input has at least 4 dims"
    assert x.shape[0] == n and x.shape[1] == n, (x.shape, n)
    assert jnp.issubdtype(x.dtype, jnp.complexfloating), x.dtype
    x = x.astype(jnp.complex64)

    rest = x.shape[2:]
    two_c = 2 * int(np.prod(rest))            # interleaved f32 channels per pixel
    total_f32 = n * n * two_c
    ap2 = float(aperture_size) ** 2

    pow2_path = (two_c & (two_c - 1)) == 0 and (n & (n - 1)) == 0
    tile_r = None
    if (total_f32 % _LANES == 0
            and total_f32 < (1 << 31)         # int32 flat indices
            and n * n <= (1 << 23)            # exact f32 pixel math
            and total_f32 // _LANES >= _MIN_KERNEL_ROWS):
        tile_r = _pick_tile(total_f32 // _LANES, two_c, pow2_path)

    if tile_r is None:
        # TODO(synk): ragged last tile (masked store) not implemented; tiny or
        # oddly shaped payloads take the fused jnp path instead.
        return _fallback_forward(x, n, aperture_size, step_f, umax)

    r_full = total_f32 // _LANES
    xf = _to_interleaved_f32(x)               # (n, n, *rest, 2) f32
    flat = xf.reshape(r_full, _LANES)         # lane-dense slab, no padding

    kernel = _make_kernel(n, two_c, tile_r, umax, step_f, ap2, pow2_path)
    spec = pl.BlockSpec((tile_r, _LANES), lambda g: (g, 0))
    y_flat = pl.pallas_call(
        kernel,
        out_shape=jax.ShapeDtypeStruct((r_full, _LANES), jnp.float32),
        grid=(r_full // tile_r,),
        in_specs=[spec],
        out_specs=spec,
        compiler_params=pltpu.CompilerParams(
            dimension_semantics=_dimension_semantics()),
        cost_estimate=pl.CostEstimate(
            flops=12 * total_f32, transcendentals=0,
            bytes_accessed=2 * total_f32 * 4),
    )(flat)

    y = _from_interleaved_f32(y_flat.reshape(xf.shape))   # (n, n, *rest) c64
    # With the aperture pupil (n, n, 1, 1), forward()'s reshape just inserts one
    # singleton diversity axis at position -3.
    return jnp.expand_dims(y, axis=-3)


def _reference(x, aperture_size, computation_size, N_pts, umax=1.0):
    """Pure-JAX mirror of the PyTorch forward (pupil realized as the aperture)."""
    step_f = computation_size / N_pts
    u_vec = jnp.arange(-umax, umax, step_f, dtype=jnp.float32)
    ux, uy = jnp.meshgrid(u_vec, u_vec, indexing="xy")
    uy = -uy
    ur2 = ux ** 2 + uy ** 2
    n = u_vec.shape[0]
    pupil = (ur2 <= aperture_size ** 2).reshape(n, n, 1, 1).astype(jnp.complex64)
    dims = x.ndim
    sh = list(pupil.shape)
    pupil_r = pupil.reshape(sh[:2] + [1] * (dims - 4) + [sh[2], 1, 1])
    return x[..., None, :, :] * pupil_r


if __name__ == "__main__":
    key = jax.random.PRNGKey(0)

    def make_input(k, shape):
        kr, ki = jax.random.split(k)
        return (jax.random.normal(kr, shape, dtype=jnp.float32)
                + 1j * jax.random.normal(ki, shape, dtype=jnp.float32)
                ).astype(jnp.complex64)

    # (trailing field shape, aperture, computation_size, N_pts); the mesh side n
    # is implied by N_pts / computation_size: N_pts=128 -> n=128, N_pts=32 -> n=16.
    cases = [
        ((2, 2), 1.0, 4.0, 128),      # pow2 channels, single-tile kernel
        ((8, 8), 1.0, 4.0, 128),      # pow2 channels, 4-tile grid
        ((3, 4, 4), 1.0, 4.0, 128),   # non-pow2 channels (f32 index path)
        ((2, 2), 1.0, 4.0, 32),       # tiny payload -> fused jnp fallback
    ]
    for field_shape, ap, cs, npts in cases:
        step = cs / npts
        n = int(np.arange(-1.0, 1.0, step).shape[0])
        key, sub = jax.random.split(key)
        x = make_input(sub, (n, n) + field_shape)

        out = jax.block_until_ready(pupil_diversity_forward(x, ap, cs, npts))
        ref = _reference(x, ap, cs, npts)

        want_shape = (n, n) + field_shape[:-2] + (1,) + field_shape[-2:]
        assert out.shape == ref.shape == want_shape, (out.shape, ref.shape, want_shape)
        assert out.dtype == jnp.complex64, out.dtype
        assert jnp.allclose(out, ref), f"mismatch vs pure-JAX reference for {field_shape}"

    print("KERNEL_OK")
</pallas_src>

<mosaic_0001>
module attributes {stable_mosaic.version = 11 : i64} {
  func.func @kernel(%arg0: i32, %arg1: memref<256x128xf32, #tpu.memory_space<vmem>>, %arg2: memref<256x128xf32, #tpu.memory_space<vmem>>) attributes {dimension_semantics = [#tpu.dimension_semantics<parallel>], iteration_bounds = array<i64: 1>, scalar_prefetch = 0 : i64, scratch_operands = 0 : i64, tpu.core_type = #tpu.core_type<tc>, window_params = [{transform_indices = @transform_0, window_bounds = array<i64: 256, 128>}, {transform_indices = @transform_1, window_bounds = array<i64: 256, 128>}]} {
    %0 = tpu.iota {dimensions = array<i32: 0>} : vector<256x128xi32>
    %1 = tpu.iota {dimensions = array<i32: 1>} : vector<256x128xi32>
    %c128_i32 = arith.constant 128 : i32
    %2 = vector.broadcast %c128_i32 : i32 to vector<256x128xi32>
    %3 = arith.muli %0, %2 : vector<256x128xi32>
    %4 = arith.addi %3, %1 : vector<256x128xi32>
    %c32768_i32 = arith.constant 32768 : i32
    %5 = arith.muli %arg0, %c32768_i32 : i32
    %6 = vector.broadcast %5 : i32 to vector<256x128xi32>
    %7 = arith.addi %4, %6 : vector<256x128xi32>
    %c3_i32 = arith.constant 3 : i32
    %8 = vector.broadcast %c3_i32 : i32 to vector<256x128xi32>
    %9 = arith.shrsi %7, %8 : vector<256x128xi32>
    %c6_i32 = arith.constant 6 : i32
    %10 = vector.broadcast %c6_i32 : i32 to vector<256x128xi32>
    %11 = arith.shrsi %9, %10 : vector<256x128xi32>
    %12 = arith.sitofp %11 : vector<256x128xi32> to vector<256x128xf32>
    %c63_i32 = arith.constant 63 : i32
    %13 = vector.broadcast %c63_i32 : i32 to vector<256x128xi32>
    %14 = arith.andi %9, %13 : vector<256x128xi32>
    %15 = arith.sitofp %14 : vector<256x128xi32> to vector<256x128xf32>
    %cst = arith.constant 3.125000e-02 : f32
    %16 = vector.broadcast %cst : f32 to vector<256x128xf32>
    %17 = arith.mulf %15, %16 : vector<256x128xf32>
    %cst_0 = arith.constant 1.000000e+00 : f32
    %18 = vector.broadcast %cst_0 : f32 to vector<256x128xf32>
    %19 = arith.subf %17, %18 : vector<256x128xf32>
    %cst_1 = arith.constant 3.125000e-02 : f32
    %20 = vector.broadcast %cst_1 : f32 to vector<256x128xf32>
    %21 = arith.mulf %12, %20 : vector<256x128xf32>
    %cst_2 = arith.constant 1.000000e+00 : f32
    %22 = vector.broadcast %cst_2 : f32 to vector<256x128xf32>
    %23 = arith.subf %21, %22 : vector<256x128xf32>
    %24 = arith.mulf %19, %19 : vector<256x128xf32>
    %25 = arith.mulf %23, %23 : vector<256x128xf32>
    %26 = arith.addf %24, %25 : vector<256x128xf32>
    %cst_3 = arith.constant 1.000000e+00 : f32
    %27 = vector.broadcast %cst_3 : f32 to vector<256x128xf32>
    %28 = arith.cmpf ole, %26, %27 : vector<256x128xf32>
    %c0 = arith.constant 0 : index
    %c0_4 = arith.constant 0 : index
    %29 = vector.load %arg1[%c0, %c0_4] : memref<256x128xf32, #tpu.memory_space<vmem>>, vector<256x128xf32>
    %cst_5 = arith.constant 0.000000e+00 : f32
    %30 = vector.broadcast %cst_5 : f32 to vector<256x128xf32>
    %31 = arith.select %28, %29, %30 : vector<256x128xi1>, vector<256x128xf32>
    %c0_6 = arith.constant 0 : index
    %c0_7 = arith.constant 0 : index
    %32 = vector.load %arg2[%c0_6, %c0_7] : memref<256x128xf32, #tpu.memory_space<vmem>>, vector<256x128xf32>
    tpu.vector_store %arg2[%c0_6, %c0_7], %31 {strides = array<i32>} : memref<256x128xf32, #tpu.memory_space<vmem>>, vector<256x128xf32>,
    return
  }
  func.func @transform_0(%arg0: i32) -> (i32, i32) {
    %c0_i32 = arith.constant 0 : i32
    %c0_i32_0 = arith.constant 0 : i32
    return %arg0, %c0_i32 : i32, i32
  }
  func.func @transform_1(%arg0: i32) -> (i32, i32) {
    %c0_i32 = arith.constant 0 : i32
    %c0_i32_0 = arith.constant 0 : i32
    return %arg0, %c0_i32 : i32, i32
  }
}

</mosaic_0001>

<bundles_post_ra>
// kernel: custom-call.1
= control target key start
LH: loop header
LB: loop body
LE: loop exit
PB: predicated region body
PF: predicated region fallthrough
CT: control target
= control target key end

     0   :  { %s51_s0 = inlined_call_operand.hbm [shape: c64[64,64,2,2], index: 0, kind: input, shape index: {}]   ;;  %s52_s1 = inlined_call_operand.vmem [shape: f32[64,64,2,2], index: 1, kind: output, shape index: {}]  }
   0x1   :  { %s2_s8 = scalar_lea.hbm %s51_s0, 4096 }
   0x2   :  { %3 = vsyncpa [#allocation0], 0  ;;  %s4_s11 = sshll.u32 %s52_s1, 4  ;;  %s5_s11 = int_to_ptr.vmem [resolvable:$true] %s4_s11 }
   0x3   :  { %s20_s12 = scalar_lea.vmem %s5_s11, 4096  ;;  %p25_p1 = scmp.lt.s32.totalorder %s5_s11, %s5_s11 }
   0x4   :  { %p21_p0 = scmp.ne.s32.totalorder %s5_s11, %s20_s12  ;;  %p26_p2 = scmp.lt.s32.totalorder %s20_s12, %s20_s12 }
   0x6   :  { %p27_p3 = por %p26_p2, %p25_p1 }
   0x8   :  { %p28_p4 = pnand %p27_p3, %p21_p0 }
   0xa   :  { %31 = shalt.err (!%p28_p4)  }
   0xb   :  { %7 = dma.hbm_to_vmem [thread:$0]  %s2_s8, 4096, %s5_s11, [#allocation0] }
   0xc   :  { %33 = dma.done.wait [#allocation0], 4096  }
   0xd   :  { %34 = vsyncadd [#allocation0], 4294963200 }
   0xe   :  { %9 = vsyncpa [#allocation0], 1 }

// kernel: custom-call
= control target key start
LH: loop header
LB: loop body
LE: loop exit
PB: predicated region body
PF: predicated region fallthrough
CT: control target
= control target key end

     0   :  { %2 = vsyncpa [#allocation0], 0  ;;  %s47_s0 = inlined_call_operand.hbm [shape: c64[64,64,2,2], index: 0, kind: input, shape index: {}]   ;;  %s48_s1 = inlined_call_operand.vmem [shape: f32[64,64,2,2], index: 1, kind: output, shape index: {}]  }
   0x1   :  { %s3_s8 = sshll.u32 %s48_s1, 4  ;;  %s4_s8 = int_to_ptr.vmem [resolvable:$true] %s3_s8 }
   0x2   :  { %s17_s9 = scalar_lea.vmem %s4_s8, 4096  ;;  %p22_p1 = scmp.lt.s32.totalorder %s4_s8, %s4_s8 }
   0x3   :  { %p18_p0 = scmp.ne.s32.totalorder %s4_s8, %s17_s9  ;;  %p23_p2 = scmp.lt.s32.totalorder %s17_s9, %s17_s9 }
   0x5   :  { %p24_p3 = por %p23_p2, %p22_p1 }
   0x7   :  { %p25_p4 = pnand %p24_p3, %p18_p0 }
   0x9   :  { %28 = shalt.err (!%p25_p4)  }
   0xa   :  { %6 = dma.hbm_to_vmem [thread:$0]  %s47_s0, 4096, %s4_s8, [#allocation0] }
   0xb   :  { %29 = dma.done.wait [#allocation0], 4096  }
   0xc   :  { %30 = vsyncadd [#allocation0], 4294963200 }
   0xd   :  { %8 = vsyncpa [#allocation0], 1 }

// kernel: pupil_diversity_forward.1
= control target key start
LH: loop header
LB: loop body
LE: loop exit
PB: predicated region body
PF: predicated region fallthrough
CT: control target
= control target key end

     0   :  { %v8_v0 = vlaneseq  ;;  %s1020_s0 = inlined_call_operand.vmem [shape: f32[256,128], index: 0, kind: input, shape index: {}]   ;;  %s1021_s1 = inlined_call_operand.vmem [shape: f32[256,128], index: 1, kind: output, shape index: {}]  }
   0x2   :  { %v731_v1 = vshrl.u32 %v8_v0, 7  ;;  %v733_v2 = vand.u32 127, %v8_v0 }
   0x4   :  { %v43_v3 = vmul.u32 128, %v731_v1  ;;  %v10_v4 = vadd.s32 8, %v731_v1  ;;  %v11_v5 = vadd.s32 16, %v731_v1  ;;  %v12_v6 = vadd.s32 24, %v731_v1 }
   0x5   :  { %v13_v7 = vadd.s32 32, %v731_v1  ;;  %v14_v8 = vadd.s32 40, %v731_v1  ;;  %v15_v9 = vadd.s32 48, %v731_v1  ;;  %v743_v10 = vadd.s32 56, %v731_v1 }
   0x6   :  { %v75_v11 = vadd.s32 %v43_v3, %v733_v2  ;;  %v44_v12 = vmul.u32 128, %v10_v4  ;;  %v45_v13 = vmul.u32 128, %v11_v5  ;;  %v747_v14 = vadd.s32 64, %v731_v1 }
   0x7   :  { %v46_v15 = vmul.u32 128, %v12_v6  ;;  %v47_v16 = vmul.u32 128, %v13_v7  ;;  %v750_v17 = vadd.s32 72, %v731_v1  ;;  %v753_v18 = vadd.s32 80, %v731_v1  ;;  %v557_v6 = vld [vmem:[%s1020_s0] sm:$0xff] }
   0x8   :  { %v141_v19 = vshra.s32 %v75_v11, 3  ;;  %v76_v20 = vadd.s32 %v44_v12, %v733_v2  ;;  %v77_v21 = vadd.s32 %v45_v13, %v733_v2  ;;  %v48_v22 = vmul.u32 128, %v14_v8 }
   0x9   :  { %v78_v23 = vadd.s32 %v46_v15, %v733_v2  ;;  %v79_v24 = vadd.s32 %v47_v16, %v733_v2  ;;  %v49_v25 = vmul.u32 128, %v15_v9  ;;  %v50_v26 = vmul.u32 128, %v743_v10  ;;  %v561_v10 = vld [vmem:[%s1020_s0 + $0x20] sm:$0xff] }
   0xa   :  { %v173_v27 = vshra.s32 %v141_v19, 6  ;;  %v237_v28 = vand.u32 63, %v141_v19  ;;  %v142_v29 = vshra.s32 %v76_v20, 3  ;;  %v143_v30 = vshra.s32 %v77_v21, 3  ;;  %v558_v19 = vld [vmem:[%s1020_s0 + $0x8] sm:$0xff] }
   0xb   :  { %v144_v31 = vshra.s32 %v78_v23, 3  ;;  %v145_v32 = vshra.s32 %v79_v24, 3  ;;  %v761_v33 = vadd.s32 %v48_v22, %v733_v2  ;;  %v764_v34 = vadd.s32 %v49_v25, %v733_v2  ;;  %v559_v24 = vld [vmem:[%s1020_s0 + $0x10] sm:$0xff] }
   0xc   :  { %v205_v35 = vcvt.s32.f32 %v173_v27  ;;  %v269_v36 = vcvt.s32.f32 %v237_v28  ;;  %v174_v37 = vshra.s32 %v142_v29, 6  ;;  %v238_v38 = vand.u32 63, %v142_v29  ;;  %v560_v27 = vld [vmem:[%s1020_s0 + $0x18] sm:$0xff] }
   0xd   :  { %v175_v39 = vshra.s32 %v143_v30, 6  ;;  %v239_v40 = vand.u32 63, %v143_v30  ;;  %v176_v41 = vshra.s32 %v144_v31, 6  ;;  %v240_v42 = vand.u32 63, %v144_v31 }
   0xe   :  { %v301_v43 = vmul.f32 0.03125, %v269_v36  ;;  %v365_v44 = vmul.f32 0.03125, %v205_v35  ;;  %v206_v45 = vcvt.s32.f32 %v174_v37  ;;  %v270_v46 = vcvt.s32.f32 %v238_v38 }
   0xf   :  { %v207_v47 = vcvt.s32.f32 %v175_v39  ;;  %v271_v48 = vcvt.s32.f32 %v239_v40  ;;  %v208_v49 = vcvt.s32.f32 %v176_v41  ;;  %v272_v50 = vcvt.s32.f32 %v240_v42 }
  0x10   :  { %v657_v51 = vadd.f32 -1.0, %v301_v43  ;;  %v689_v52 = vadd.f32 -1.0, %v365_v44  ;;  %v302_v53 = vmul.f32 0.03125, %v270_v46  ;;  %v366_v54 = vmul.f32 0.03125, %v206_v45 }
  0x11   :  { %v303_v55 = vmul.f32 0.03125, %v271_v48  ;;  %v367_v56 = vmul.f32 0.03125, %v207_v47  ;;  %v304_v57 = vmul.f32 0.03125, %v272_v50  ;;  %v368_v58 = vmul.f32 0.03125, %v208_v49 }
  0x12   :  { %v429_v59 = vmul.f32 %v657_v51, %v657_v51  ;;  %v461_v60 = vmul.f32 %v689_v52, %v689_v52  ;;  %v658_v61 = vadd.f32 -1.0, %v302_v53  ;;  %v690_v62 = vadd.f32 -1.0, %v366_v54 }
  0x13   :  { %v659_v63 = vadd.f32 -1.0, %v303_v55  ;;  %v691_v0 = vadd.f32 -1.0, %v367_v56  ;;  %v660_v3 = vadd.f32 -1.0, %v304_v57  ;;  %v692_v4 = vadd.f32 -1.0, %v368_v58 }
  0x14   :  { %v493_v5 = vadd.f32 %v461_v60, %v429_v59  ;;  %v430_v7 = vmul.f32 %v658_v61, %v658_v61  ;;  %v462_v8 = vmul.f32 %v690_v62, %v690_v62  ;;  %v177_v9 = vshra.s32 %v145_v32, 6 }
  0x15   :  { %v431_v11 = vmul.f32 %v659_v63, %v659_v63  ;;  %v463_v12 = vmul.f32 %v691_v0, %v691_v0  ;;  %v432_v13 = vmul.f32 %v660_v3, %v660_v3  ;;  %v464_v15 = vmul.f32 %v692_v4, %v692_v4 }
  0x16   :  { %vm525_vm0 = vcmp.le.f32.partialorder %v493_v5, 1.0  ;;  %v494_v16 = vadd.f32 %v462_v8, %v430_v7  ;;  %v209_v20 = vcvt.s32.f32 %v177_v9  ;;  %v241_v21 = vand.u32 63, %v145_v32 }
  0x17   :  { %v589_v22 = vsel %vm525_vm0, %v557_v6, 0.0  ;;  %v495_v23 = vadd.f32 %v463_v12, %v431_v11  ;;  %v496_v25 = vadd.f32 %v464_v15, %v432_v13  ;;  %v146_v28 = vshra.s32 %v761_v33, 3  ;;  %v562_v15 = vld [vmem:[%s1020_s0 + $0x28] sm:$0xff] }
  0x18   :  { %621 = vst [vmem:[%s1021_s1] sm:$0xff] %v589_v22  ;;  %vm526_vm1 = vcmp.le.f32.partialorder %v494_v16, 1.0  ;;  %v273_v29 = vcvt.s32.f32 %v241_v21  ;;  %v369_v30 = vmul.f32 0.03125, %v209_v20  ;;  %v147_v31 = vshra.s32 %v764_v34, 3 }
  0x19   :  { %v590_v32 = vsel %vm526_vm1, %v558_v19, 0.0  ;;  %vm527_vm2 = vcmp.le.f32.partialorder %v495_v23, 1.0  ;;  %vm528_vm3 = vcmp.le.f32.partialorder %v496_v25, 1.0  ;;  %v178_v35 = vshra.s32 %v146_v28, 6  ;;  %v563_v19 = vld [vmem:[%s1020_s0 + $0x30] sm:$0xff] }
  0x1a   :  { %622 = vst [vmem:[%s1021_s1 + $0x8] sm:$0xff] %v590_v32  ;;  %v591_v36 = vsel %vm527_vm2, %v559_v24, 0.0  ;;  %v592_v37 = vsel %vm528_vm3, %v560_v27, 0.0  ;;  %v305_v33 = vmul.f32 0.03125, %v273_v29  ;;  %v693_v38 = vadd.f32 -1.0, %v369_v30 }
  0x1b   :  { %623 = vst [vmem:[%s1021_s1 + $0x10] sm:$0xff] %v591_v36  ;;  %624 = vst [vmem:[%s1021_s1 + $0x18] sm:$0xff] %v592_v37  ;;  %v210_v34 = vcvt.s32.f32 %v178_v35  ;;  %v242_v39 = vand.u32 63, %v146_v28  ;;  %v179_v40 = vshra.s32 %v147_v31, 6  ;;  %v243_v41 = vand.u32 63, %v147_v31 }
  0x1c   :  { %v661_v42 = vadd.f32 -1.0, %v305_v33  ;;  %v465_v43 = vmul.f32 %v693_v38, %v693_v38  ;;  %v82_v44 = vadd.s32 %v50_v26, %v733_v2  ;;  %v51_v45 = vmul.u32 128, %v747_v14  ;;  %v564_v38 = vld [vmem:[%s1020_s0 + $0x38] sm:$0xff] }
  0x1d   :  { %v274_v46 = vcvt.s32.f32 %v242_v39  ;;  %v370_v47 = vmul.f32 0.03125, %v210_v34  ;;  %v211_v48 = vcvt.s32.f32 %v179_v40  ;;  %v275_v49 = vcvt.s32.f32 %v243_v41 }
  0x1e   :  { %v433_v50 = vmul.f32 %v661_v42, %v661_v42  ;;  %v148_v51 = vshra.s32 %v82_v44, 3  ;;  %v83_v52 = vadd.s32 %v51_v45, %v733_v2  ;;  %v52_v53 = vmul.u32 128, %v750_v17 }
  0x1f   :  { %v306_v54 = vmul.f32 0.03125, %v274_v46  ;;  %v694_v55 = vadd.f32 -1.0, %v370_v47  ;;  %v307_v56 = vmul.f32 0.03125, %v275_v49  ;;  %v371_v57 = vmul.f32 0.03125, %v211_v48 }
  0x20   :  { %v497_v58 = vadd.f32 %v465_v43, %v433_v50  ;;  %v180_v14 = vshra.s32 %v148_v51, 6  ;;  %v244_v26 = vand.u32 63, %v148_v51  ;;  %v149_v59 = vshra.s32 %v83_v52, 3 }
  0x21   :  { %v662_v60 = vadd.f32 -1.0, %v306_v54  ;;  %v466_v61 = vmul.f32 %v694_v55, %v694_v55  ;;  %v663_v62 = vadd.f32 -1.0, %v307_v56  ;;  %v695_v63 = vadd.f32 -1.0, %v371_v57  ;;  %v565_v57 = vld [vmem:[%s1020_s0 + $0x40] sm:$0xff] }
  0x22   :  { %vm529_vm4 = vcmp.le.f32.partialorder %v497_v58, 1.0  ;;  %v212_v0 = vcvt.s32.f32 %v180_v14  ;;  %v276_v3 = vcvt.s32.f32 %v244_v26  ;;  %v181_v17 = vshra.s32 %v149_v59, 6 }
  0x23   :  { %v593_v4 = vsel %vm529_vm4, %v561_v10, 0.0  ;;  %v434_v5 = vmul.f32 %v662_v60, %v662_v60  ;;  %v435_v6 = vmul.f32 %v663_v62, %v663_v62  ;;  %v467_v7 = vmul.f32 %v695_v63, %v695_v63 }
  0x24   :  { %625 = vst [vmem:[%s1021_s1 + $0x20] sm:$0xff] %v593_v4  ;;  %v308_v8 = vmul.f32 0.03125, %v276_v3  ;;  %v372_v9 = vmul.f32 0.03125, %v212_v0  ;;  %v213_v11 = vcvt.s32.f32 %v181_v17  ;;  %v245_v12 = vand.u32 63, %v149_v59 }
  0x25   :  { %v498_v13 = vadd.f32 %v466_v61, %v434_v5  ;;  %v499_v16 = vadd.f32 %v467_v7, %v435_v6  ;;  %v84_v20 = vadd.s32 %v52_v53, %v733_v2  ;;  %v53_v21 = vmul.u32 128, %v753_v18  ;;  %v566_v7 = vld [vmem:[%s1020_s0 + $0x48] sm:$0xff] }
  0x26   :  { %v664_v22 = vadd.f32 -1.0, %v308_v8  ;;  %v696_v23 = vadd.f32 -1.0, %v372_v9  ;;  %v277_v24 = vcvt.s32.f32 %v245_v12  ;;  %v373_v25 = vmul.f32 0.03125, %v213_v11 }
  0x27   :  { %vm530_vm5 = vcmp.le.f32.partialorder %v498_v13, 1.0  ;;  %vm531_vm6 = vcmp.le.f32.partialorder %v499_v16, 1.0  ;;  %v150_v27 = vshra.s32 %v84_v20, 3  ;;  %v85_v28 = vadd.s32 %v53_v21, %v733_v2 }
  0x28   :  { %v594_v29 = vsel %vm530_vm5, %v562_v15, 0.0  ;;  %v595_v30 = vsel %vm531_vm6, %v563_v19, 0.0  ;;  %v436_v31 = vmul.f32 %v664_v22, %v664_v22  ;;  %v468_v32 = vmul.f32 %v696_v23, %v696_v23 }
  0x29   :  { %626 = vst [vmem:[%s1021_s1 + $0x28] sm:$0xff] %v594_v29  ;;  %627 = vst [vmem:[%s1021_s1 + $0x30] sm:$0xff] %v595_v30  ;;  %v309_v18 = vmul.f32 0.03125, %v277_v24  ;;  %v697_v35 = vadd.f32 -1.0, %v373_v25  ;;  %v182_v36 = vshra.s32 %v150_v27, 6  ;;  %v246_v37 = vand.u32 63, %v150_v27 }
  0x2a   :  { %v500_v33 = vadd.f32 %v468_v32, %v436_v31  ;;  %v151_v34 = vshra.s32 %v85_v28, 3  ;;  %v20_v39 = vadd.s32 88, %v731_v1  ;;  %v21_v40 = vadd.s32 96, %v731_v1  ;;  %v567_v24 = vld [vmem:[%s1020_s0 + $0x50] sm:$0xff] }
  0x2b   :  { %v665_v41 = vadd.f32 -1.0, %v309_v18  ;;  %v469_v42 = vmul.f32 %v697_v35, %v697_v35  ;;  %v214_v43 = vcvt.s32.f32 %v182_v36  ;;  %v278_v44 = vcvt.s32.f32 %v246_v37 }
  0x2c   :  { %vm532_vm7 = vcmp.le.f32.partialorder %v500_v33, 1.0  ;;  %v183_v45 = vshra.s32 %v151_v34, 6  ;;  %v247_v46 = vand.u32 63, %v151_v34  ;;  %v54_v47 = vmul.u32 128, %v20_v39 }
  0x2d   :  { %v596_v48 = vsel %vm532_vm7, %v564_v38, 0.0  ;;  %v437_v49 = vmul.f32 %v665_v41, %v665_v41  ;;  %v310_v50 = vmul.f32 0.03125, %v278_v44  ;;  %v374_v51 = vmul.f32 0.03125, %v214_v43 }
  0x2e   :  { %628 = vst [vmem:[%s1021_s1 + $0x38] sm:$0xff] %v596_v48  ;;  %v215_v52 = vcvt.s32.f32 %v183_v45  ;;  %v279_v53 = vcvt.s32.f32 %v247_v46  ;;  %v86_v54 = vadd.s32 %v54_v47, %v733_v2  ;;  %v55_v55 = vmul.u32 128, %v21_v40 }
  0x2f   :  { %v501_v56 = vadd.f32 %v469_v42, %v437_v49  ;;  %v666_v58 = vadd.f32 -1.0, %v310_v50  ;;  %v698_v10 = vadd.f32 -1.0, %v374_v51  ;;  %v22_v14 = vadd.s32 104, %v731_v1  ;;  %v568_v51 = vld [vmem:[%s1020_s0 + $0x58] sm:$0xff] }
  0x30   :  { %v311_v26 = vmul.f32 0.03125, %v279_v53  ;;  %v375_v59 = vmul.f32 0.03125, %v215_v52  ;;  %v152_v60 = vshra.s32 %v86_v54, 3  ;;  %v87_v61 = vadd.s32 %v55_v55, %v733_v2 }
  0x31   :  { %vm533_vm8 = vcmp.le.f32.partialorder %v501_v56, 1.0  ;;  %v438_v62 = vmul.f32 %v666_v58, %v666_v58  ;;  %v470_v63 = vmul.f32 %v698_v10, %v698_v10  ;;  %v56_v0 = vmul.u32 128, %v22_v14  ;;  %v569_v14 = vld [vmem:[%s1020_s0 + $0x60] sm:$0xff] }
  0x32   :  { %v597_v3 = vsel %vm533_vm8, %v565_v57, 0.0  ;;  %v667_v17 = vadd.f32 -1.0, %v311_v26  ;;  %v699_v4 = vadd.f32 -1.0, %v375_v59  ;;  %v184_v5 = vshra.s32 %v152_v60, 6 }
  0x33   :  { %629 = vst [vmem:[%s1021_s1 + $0x40] sm:$0xff] %v597_v3  ;;  %v502_v6 = vadd.f32 %v470_v63, %v438_v62  ;;  %v248_v8 = vand.u32 63, %v152_v60  ;;  %v153_v9 = vshra.s32 %v87_v61, 3  ;;  %v88_v11 = vadd.s32 %v56_v0, %v733_v2 }
  0x34   :  { %v439_v12 = vmul.f32 %v667_v17, %v667_v17  ;;  %v471_v13 = vmul.f32 %v699_v4, %v699_v4  ;;  %v216_v15 = vcvt.s32.f32 %v184_v5  ;;  %v23_v16 = vadd.s32 112, %v731_v1 }
  0x35   :  { %vm534_vm9 = vcmp.le.f32.partialorder %v502_v6, 1.0  ;;  %v280_v19 = vcvt.s32.f32 %v248_v8  ;;  %v185_v20 = vshra.s32 %v153_v9, 6  ;;  %v249_v21 = vand.u32 63, %v153_v9  ;;  %v570_v6 = vld [vmem:[%s1020_s0 + $0x68] sm:$0xff] }
  0x36   :  { %v598_v22 = vsel %vm534_vm9, %v566_v7, 0.0  ;;  %v503_v23 = vadd.f32 %v471_v13, %v439_v12  ;;  %v376_v25 = vmul.f32 0.03125, %v216_v15  ;;  %v154_v27 = vshra.s32 %v88_v11, 3 }
  0x37   :  { %630 = vst [vmem:[%s1021_s1 + $0x48] sm:$0xff] %v598_v22  ;;  %v312_v28 = vmul.f32 0.03125, %v280_v19  ;;  %v217_v29 = vcvt.s32.f32 %v185_v20  ;;  %v281_v30 = vcvt.s32.f32 %v249_v21  ;;  %v57_v31 = vmul.u32 128, %v23_v16 }
  0x38   :  { %vm535_vm10 = vcmp.le.f32.partialorder %v503_v23, 1.0  ;;  %v700_v32 = vadd.f32 -1.0, %v376_v25  ;;  %v186_v18 = vshra.s32 %v154_v27, 6  ;;  %v250_v35 = vand.u32 63, %v154_v27 }
  0x39   :  { %v599_v36 = vsel %vm535_vm10, %v567_v24, 0.0  ;;  %v668_v37 = vadd.f32 -1.0, %v312_v28  ;;  %v313_v33 = vmul.f32 0.03125, %v281_v30  ;;  %v377_v38 = vmul.f32 0.03125, %v217_v29 }
  0x3a   :  { %631 = vst [vmem:[%s1021_s1 + $0x50] sm:$0xff] %v599_v36  ;;  %v472_v34 = vmul.f32 %v700_v32, %v700_v32  ;;  %v218_v39 = vcvt.s32.f32 %v186_v18  ;;  %v282_v40 = vcvt.s32.f32 %v250_v35  ;;  %v89_v41 = vadd.s32 %v57_v31, %v733_v2 }
  0x3b   :  { %v440_v42 = vmul.f32 %v668_v37, %v668_v37  ;;  %v669_v43 = vadd.f32 -1.0, %v313_v33  ;;  %v701_v44 = vadd.f32 -1.0, %v377_v38  ;;  %v24_v45 = vadd.s32 120, %v731_v1  ;;  %v571_v38 = vld [vmem:[%s1020_s0 + $0x70] sm:$0xff] }
  0x3c   :  { %v314_v46 = vmul.f32 0.03125, %v282_v40  ;;  %v378_v47 = vmul.f32 0.03125, %v218_v39  ;;  %v155_v48 = vshra.s32 %v89_v41, 3  ;;  %v25_v49 = vadd.s32 128, %v731_v1 }
  0x3d   :  { %v504_v50 = vadd.f32 %v472_v34, %v440_v42  ;;  %v441_v52 = vmul.f32 %v669_v43, %v669_v43  ;;  %v473_v53 = vmul.f32 %v701_v44, %v701_v44  ;;  %v58_v54 = vmul.u32 128, %v24_v45 }
  0x3e   :  { %v670_v55 = vadd.f32 -1.0, %v314_v46  ;;  %v702_v56 = vadd.f32 -1.0, %v378_v47  ;;  %v187_v57 = vshra.s32 %v155_v48, 6  ;;  %v251_v58 = vand.u32 63, %v155_v48 }
  0x3f   :  { %vm536_vm11 = vcmp.le.f32.partialorder %v504_v50, 1.0  ;;  %v505_v10 = vadd.f32 %v473_v53, %v441_v52  ;;  %v90_v26 = vadd.s32 %v58_v54, %v733_v2  ;;  %v59_v59 = vmul.u32 128, %v25_v49  ;;  %v572_v53 = vld [vmem:[%s1020_s0 + $0x78] sm:$0xff] }
  0x40   :  { %v600_v60 = vsel %vm536_vm11, %v568_v51, 0.0  ;;  %v442_v61 = vmul.f32 %v670_v55, %v670_v55  ;;  %v474_v62 = vmul.f32 %v702_v56, %v702_v56  ;;  %v219_v63 = vcvt.s32.f32 %v187_v57 }
  0x41   :  { %632 = vst [vmem:[%s1021_s1 + $0x58] sm:$0xff] %v600_v60  ;;  %vm537_vm12 = vcmp.le.f32.partialorder %v505_v10, 1.0  ;;  %v283_v0 = vcvt.s32.f32 %v251_v58  ;;  %v156_v3 = vshra.s32 %v90_v26, 3  ;;  %v91_v17 = vadd.s32 %v59_v59, %v733_v2 }
  0x42   :  { %v601_v4 = vsel %vm537_vm12, %v569_v14, 0.0  ;;  %v506_v5 = vadd.f32 %v474_v62, %v442_v61  ;;  %v379_v7 = vmul.f32 0.03125, %v219_v63  ;;  %v26_v8 = vadd.s32 136, %v731_v1  ;;  %v573_v63 = vld [vmem:[%s1020_s0 + $0x80] sm:$0xff] }
  0x43   :  { %633 = vst [vmem:[%s1021_s1 + $0x60] sm:$0xff] %v601_v4  ;;  %v315_v9 = vmul.f32 0.03125, %v283_v0  ;;  %v188_v11 = vshra.s32 %v156_v3, 6  ;;  %v252_v12 = vand.u32 63, %v156_v3  ;;  %v157_v13 = vshra.s32 %v91_v17, 3 }
  0x44   :  { %vm538_vm13 = vcmp.le.f32.partialorder %v506_v5, 1.0  ;;  %v703_v15 = vadd.f32 -1.0, %v379_v7  ;;  %v60_v16 = vmul.u32 128, %v26_v8  ;;  %v27_v19 = vadd.s32 144, %v731_v1 }
  0x45   :  { %v602_v20 = vsel %vm538_vm13, %v570_v6, 0.0  ;;  %v671_v21 = vadd.f32 -1.0, %v315_v9  ;;  %v220_v22 = vcvt.s32.f32 %v188_v11  ;;  %v284_v23 = vcvt.s32.f32 %v252_v12 }
  0x46   :  { %634 = vst [vmem:[%s1021_s1 + $0x68] sm:$0xff] %v602_v20  ;;  %v475_v24 = vmul.f32 %v703_v15, %v703_v15  ;;  %v189_v25 = vshra.s32 %v157_v13, 6  ;;  %v253_v27 = vand.u32 63, %v157_v13  ;;  %v92_v28 = vadd.s32 %v60_v16, %v733_v2 }
  0x47   :  { %v443_v29 = vmul.f32 %v671_v21, %v671_v21  ;;  %v316_v30 = vmul.f32 0.03125, %v284_v23  ;;  %v380_v31 = vmul.f32 0.03125, %v220_v22  ;;  %v61_v32 = vmul.u32 128, %v27_v19  ;;  %v574_v23 = vld [vmem:[%s1020_s0 + $0x88] sm:$0xff] }
  0x48   :  { %v221_v18 = vcvt.s32.f32 %v189_v25  ;;  %v285_v35 = vcvt.s32.f32 %v253_v27  ;;  %v158_v36 = vshra.s32 %v92_v28, 3  ;;  %v28_v37 = vadd.s32 152, %v731_v1 }
  0x49   :  { %v507_v33 = vadd.f32 %v475_v24, %v443_v29  ;;  %v672_v34 = vadd.f32 -1.0, %v316_v30  ;;  %v704_v39 = vadd.f32 -1.0, %v380_v31  ;;  %v93_v40 = vadd.s32 %v61_v32, %v733_v2 }
  0x4a   :  { %v317_v41 = vmul.f32 0.03125, %v285_v35  ;;  %v381_v42 = vmul.f32 0.03125, %v221_v18  ;;  %v190_v43 = vshra.s32 %v158_v36, 6  ;;  %v254_v44 = vand.u32 63, %v158_v36  ;;  %v575_v18 = vld [vmem:[%s1020_s0 + $0x90] sm:$0xff] }
  0x4b   :  { %vm539_vm14 = vcmp.le.f32.partialorder %v507_v33, 1.0  ;;  %v444_v45 = vmul.f32 %v672_v34, %v672_v34  ;;  %v476_v46 = vmul.f32 %v704_v39, %v704_v39  ;;  %v159_v47 = vshra.s32 %v93_v40, 3 }
  0x4c   :  { %v603_v48 = vsel %vm539_vm14, %v571_v38, 0.0  ;;  %v673_v49 = vadd.f32 -1.0, %v317_v41  ;;  %v705_v50 = vadd.f32 -1.0, %v381_v42  ;;  %v222_v51 = vcvt.s32.f32 %v190_v43 }
  0x4d   :  { %635 = vst [vmem:[%s1021_s1 + $0x70] sm:$0xff] %v603_v48  ;;  %v508_v52 = vadd.f32 %v476_v46, %v444_v45  ;;  %v286_v54 = vcvt.s32.f32 %v254_v44  ;;  %v191_v55 = vshra.s32 %v159_v47, 6  ;;  %v255_v56 = vand.u32 63, %v159_v47 }
  0x4e   :  { %v445_v57 = vmul.f32 %v673_v49, %v673_v49  ;;  %v477_v58 = vmul.f32 %v705_v50, %v705_v50  ;;  %v382_v10 = vmul.f32 0.03125, %v222_v51  ;;  %v62_v14 = vmul.u32 128, %v28_v37 }
  0x4f   :  { %vm540_vm15 = vcmp.le.f32.partialorder %v508_v52, 1.0  ;;  %v318_v26 = vmul.f32 0.03125, %v286_v54  ;;  %v223_v59 = vcvt.s32.f32 %v191_v55  ;;  %v287_v60 = vcvt.s32.f32 %v255_v56 }
  0x50   :  { %v604_v61 = vsel %vm540_vm15, %v572_v53, 0.0  ;;  %v509_v62 = vadd.f32 %v477_v58, %v445_v57  ;;  %v706_v0 = vadd.f32 -1.0, %v382_v10  ;;  %v94_v3 = vadd.s32 %v62_v14, %v733_v2  ;;  %v576_v10 = vld [vmem:[%s1020_s0 + $0x98] sm:$0xff] }
  0x51   :  { %636 = vst [vmem:[%s1021_s1 + $0x78] sm:$0xff] %v604_v61  ;;  %v674_v17 = vadd.f32 -1.0, %v318_v26  ;;  %v319_v4 = vmul.f32 0.03125, %v287_v60  ;;  %v383_v5 = vmul.f32 0.03125, %v223_v59  ;;  %v29_v6 = vadd.s32 160, %v731_v1 }
  0x52   :  { %vm541_vm0 = vcmp.le.f32.partialorder %v509_v62, 1.0  ;;  %v478_v7 = vmul.f32 %v706_v0, %v706_v0  ;;  %v160_v8 = vshra.s32 %v94_v3, 3  ;;  %v30_v9 = vadd.s32 168, %v731_v1 }
  0x53   :  { %v605_v11 = vsel %vm541_vm0, %v573_v63, 0.0  ;;  %v446_v12 = vmul.f32 %v674_v17, %v674_v17  ;;  %v675_v13 = vadd.f32 -1.0, %v319_v4  ;;  %v707_v15 = vadd.f32 -1.0, %v383_v5 }
  0x54   :  { %637 = vst [vmem:[%s1021_s1 + $0x80] sm:$0xff] %v605_v11  ;;  %v192_v16 = vshra.s32 %v160_v8, 6  ;;  %v256_v19 = vand.u32 63, %v160_v8  ;;  %v63_v20 = vmul.u32 128, %v29_v6  ;;  %v64_v21 = vmul.u32 128, %v30_v9 }
  0x55   :  { %v510_v22 = vadd.f32 %v478_v7, %v446_v12  ;;  %v447_v24 = vmul.f32 %v675_v13, %v675_v13  ;;  %v479_v25 = vmul.f32 %v707_v15, %v707_v15  ;;  %v31_v27 = vadd.s32 176, %v731_v1 }
  0x56   :  { %v224_v28 = vcvt.s32.f32 %v192_v16  ;;  %v288_v29 = vcvt.s32.f32 %v256_v19  ;;  %v95_v30 = vadd.s32 %v63_v20, %v733_v2  ;;  %v96_v31 = vadd.s32 %v64_v21, %v733_v2 }
  0x57   :  { %vm542_vm1 = vcmp.le.f32.partialorder %v510_v22, 1.0  ;;  %v511_v32 = vadd.f32 %v479_v25, %v447_v24  ;;  %v65_v35 = vmul.u32 128, %v31_v27  ;;  %v32_v36 = vadd.s32 184, %v731_v1  ;;  %v577_v25 = vld [vmem:[%s1020_s0 + $0xa0] sm:$0xff] }
  0x58   :  { %v606_v37 = vsel %vm542_vm1, %v574_v23, 0.0  ;;  %v320_v33 = vmul.f32 0.03125, %v288_v29  ;;  %v384_v38 = vmul.f32 0.03125, %v224_v28  ;;  %v161_v34 = vshra.s32 %v95_v30, 3  ;;  %v578_v28 = vld [vmem:[%s1020_s0 + $0xa8] sm:$0xff] }
  0x59   :  { %638 = vst [vmem:[%s1021_s1 + $0x88] sm:$0xff] %v606_v37  ;;  %vm543_vm2 = vcmp.le.f32.partialorder %v511_v32, 1.0  ;;  %v162_v39 = vshra.s32 %v96_v31, 3  ;;  %v97_v40 = vadd.s32 %v65_v35, %v733_v2  ;;  %v66_v41 = vmul.u32 128, %v32_v36 }
  0x5a   :  { %v607_v42 = vsel %vm543_vm2, %v575_v18, 0.0  ;;  %v676_v43 = vadd.f32 -1.0, %v320_v33  ;;  %v708_v44 = vadd.f32 -1.0, %v384_v38  ;;  %v193_v45 = vshra.s32 %v161_v34, 6 }
  0x5b   :  { %639 = vst [vmem:[%s1021_s1 + $0x90] sm:$0xff] %v607_v42  ;;  %v257_v46 = vand.u32 63, %v161_v34  ;;  %v194_v47 = vshra.s32 %v162_v39, 6  ;;  %v258_v48 = vand.u32 63, %v162_v39  ;;  %v163_v49 = vshra.s32 %v97_v40, 3  ;;  %v579_v39 = vld [vmem:[%s1020_s0 + $0xb0] sm:$0xff] }
  0x5c   :  { %v448_v50 = vmul.f32 %v676_v43, %v676_v43  ;;  %v480_v51 = vmul.f32 %v708_v44, %v708_v44  ;;  %v225_v52 = vcvt.s32.f32 %v193_v45  ;;  %v98_v53 = vadd.s32 %v66_v41, %v733_v2 }
  0x5d   :  { %v289_v54 = vcvt.s32.f32 %v257_v46  ;;  %v226_v55 = vcvt.s32.f32 %v194_v47  ;;  %v290_v56 = vcvt.s32.f32 %v258_v48  ;;  %v195_v57 = vshra.s32 %v163_v49, 6 }
  0x5e   :  { %v512_v58 = vadd.f32 %v480_v51, %v448_v50  ;;  %v385_v14 = vmul.f32 0.03125, %v225_v52  ;;  %v259_v26 = vand.u32 63, %v163_v49  ;;  %v164_v59 = vshra.s32 %v98_v53, 3 }
  0x5f   :  { %v321_v60 = vmul.f32 0.03125, %v289_v54  ;;  %v322_v61 = vmul.f32 0.03125, %v290_v56  ;;  %v386_v62 = vmul.f32 0.03125, %v226_v55  ;;  %v227_v63 = vcvt.s32.f32 %v195_v57  ;;  %v580_v57 = vld [vmem:[%s1020_s0 + $0xb8] sm:$0xff] }
  0x60   :  { %vm544_vm3 = vcmp.le.f32.partialorder %v512_v58, 1.0  ;;  %v709_v0 = vadd.f32 -1.0, %v385_v14  ;;  %v291_v3 = vcvt.s32.f32 %v259_v26  ;;  %v196_v17 = vshra.s32 %v164_v59, 6 }
  0x61   :  { %v608_v4 = vsel %vm544_vm3, %v576_v10, 0.0  ;;  %v677_v5 = vadd.f32 -1.0, %v321_v60  ;;  %v678_v6 = vadd.f32 -1.0, %v322_v61  ;;  %v710_v7 = vadd.f32 -1.0, %v386_v62 }
  0x62   :  { %640 = vst [vmem:[%s1021_s1 + $0x98] sm:$0xff] %v608_v4  ;;  %v481_v8 = vmul.f32 %v709_v0, %v709_v0  ;;  %v323_v9 = vmul.f32 0.03125, %v291_v3  ;;  %v387_v11 = vmul.f32 0.03125, %v227_v63  ;;  %v228_v12 = vcvt.s32.f32 %v196_v17 }
  0x63   :  { %v449_v13 = vmul.f32 %v677_v5, %v677_v5  ;;  %v450_v15 = vmul.f32 %v678_v6, %v678_v6  ;;  %v482_v16 = vmul.f32 %v710_v7, %v710_v7  ;;  %v260_v19 = vand.u32 63, %v164_v59 }
  0x64   :  { %v679_v20 = vadd.f32 -1.0, %v323_v9  ;;  %v711_v21 = vadd.f32 -1.0, %v387_v11  ;;  %v388_v22 = vmul.f32 0.03125, %v228_v12  ;;  %v33_v23 = vadd.s32 192, %v731_v1 }
  0x65   :  { %v513_v24 = vadd.f32 %v481_v8, %v449_v13  ;;  %v514_v27 = vadd.f32 %v482_v16, %v450_v15  ;;  %v292_v29 = vcvt.s32.f32 %v260_v19  ;;  %v34_v30 = vadd.s32 200, %v731_v1 }
  0x66   :  { %v451_v31 = vmul.f32 %v679_v20, %v679_v20  ;;  %v483_v32 = vmul.f32 %v711_v21, %v711_v21  ;;  %v712_v18 = vadd.f32 -1.0, %v388_v22  ;;  %v67_v35 = vmul.u32 128, %v33_v23 }
  0x67   :  { %vm545_vm4 = vcmp.le.f32.partialorder %v513_v24, 1.0  ;;  %vm546_vm5 = vcmp.le.f32.partialorder %v514_v27, 1.0  ;;  %v324_v36 = vmul.f32 0.03125, %v292_v29  ;;  %v68_v37 = vmul.u32 128, %v34_v30 }
  0x68   :  { %v609_v33 = vsel %vm545_vm4, %v577_v25, 0.0  ;;  %v610_v38 = vsel %vm546_vm5, %v578_v28, 0.0  ;;  %v515_v34 = vadd.f32 %v483_v32, %v451_v31  ;;  %v484_v40 = vmul.f32 %v712_v18, %v712_v18 }
  0x69   :  { %641 = vst [vmem:[%s1021_s1 + $0xa0] sm:$0xff] %v609_v33  ;;  %642 = vst [vmem:[%s1021_s1 + $0xa8] sm:$0xff] %v610_v38  ;;  %v680_v41 = vadd.f32 -1.0, %v324_v36  ;;  %v99_v42 = vadd.s32 %v67_v35, %v733_v2  ;;  %v100_v43 = vadd.s32 %v68_v37, %v733_v2  ;;  %v35_v44 = vadd.s32 208, %v731_v1  ;;  %v581_v36 = vld [vmem:[%s1020_s0 + $0xc0] sm:$0xff] }
  0x6a   :  { %vm547_vm6 = vcmp.le.f32.partialorder %v515_v34, 1.0  ;;  %v36_v45 = vadd.s32 216, %v731_v1  ;;  %v37_v46 = vadd.s32 224, %v731_v1  ;;  %v946_v47 = vadd.s32 232, %v731_v1 }
  0x6b   :  { %v611_v48 = vsel %vm547_vm6, %v579_v39, 0.0  ;;  %v452_v49 = vmul.f32 %v680_v41, %v680_v41  ;;  %v165_v50 = vshra.s32 %v99_v42, 3  ;;  %v166_v51 = vshra.s32 %v100_v43, 3  ;;  %v582_v39 = vld [vmem:[%s1020_s0 + $0xc8] sm:$0xff] }
  0x6c   :  { %643 = vst [vmem:[%s1021_s1 + $0xb0] sm:$0xff] %v611_v48  ;;  %v69_v52 = vmul.u32 128, %v35_v44  ;;  %v70_v53 = vmul.u32 128, %v36_v45  ;;  %v952_v54 = vadd.s32 240, %v731_v1  ;;  %v955_v55 = vadd.s32 248, %v731_v1 }
  0x6d   :  { %v516_v56 = vadd.f32 %v484_v40, %v452_v49  ;;  %v197_v58 = vshra.s32 %v165_v50, 6  ;;  %v261_v10 = vand.u32 63, %v165_v50  ;;  %v198_v14 = vshra.s32 %v166_v51, 6 }
  0x6e   :  { %v262_v26 = vand.u32 63, %v166_v51  ;;  %v101_v59 = vadd.s32 %v69_v52, %v733_v2  ;;  %v102_v60 = vadd.s32 %v70_v53, %v733_v2  ;;  %v71_v61 = vmul.u32 128, %v37_v46 }
  0x6f   :  { %vm548_vm7 = vcmp.le.f32.partialorder %v516_v56, 1.0  ;;  %v229_v62 = vcvt.s32.f32 %v197_v58  ;;  %v293_v63 = vcvt.s32.f32 %v261_v10  ;;  %v230_v0 = vcvt.s32.f32 %v198_v14  ;;  %v583_v56 = vld [vmem:[%s1020_s0 + $0xd0] sm:$0xff] }
  0x70   :  { %v612_v1 = vsel %vm548_vm7, %v580_v57, 0.0  ;;  %v294_v3 = vcvt.s32.f32 %v262_v26  ;;  %v167_v17 = vshra.s32 %v101_v59, 3  ;;  %v168_v4 = vshra.s32 %v102_v60, 3  ;;  %v584_v26 = vld [vmem:[%s1020_s0 + $0xd8] sm:$0xff] }
  0x71   :  { %644 = vst [vmem:[%s1021_s1 + $0xb8] sm:$0xff] %v612_v1  ;;  %v325_v5 = vmul.f32 0.03125, %v293_v63  ;;  %v389_v6 = vmul.f32 0.03125, %v229_v62  ;;  %v390_v7 = vmul.f32 0.03125, %v230_v0  ;;  %v103_v8 = vadd.s32 %v71_v61, %v733_v2 }
  0x72   :  { %v326_v9 = vmul.f32 0.03125, %v294_v3  ;;  %v199_v11 = vshra.s32 %v167_v17, 6  ;;  %v263_v12 = vand.u32 63, %v167_v17  ;;  %v200_v13 = vshra.s32 %v168_v4, 6 }
  0x73   :  { %v681_v15 = vadd.f32 -1.0, %v325_v5  ;;  %v713_v16 = vadd.f32 -1.0, %v389_v6  ;;  %v714_v19 = vadd.f32 -1.0, %v390_v7  ;;  %v264_v20 = vand.u32 63, %v168_v4 }
  0x74   :  { %v682_v21 = vadd.f32 -1.0, %v326_v9  ;;  %v231_v22 = vcvt.s32.f32 %v199_v11  ;;  %v295_v23 = vcvt.s32.f32 %v263_v12  ;;  %v232_v24 = vcvt.s32.f32 %v200_v13 }
  0x75   :  { %v453_v25 = vmul.f32 %v681_v15, %v681_v15  ;;  %v485_v27 = vmul.f32 %v713_v16, %v713_v16  ;;  %v486_v28 = vmul.f32 %v714_v19, %v714_v19  ;;  %v296_v29 = vcvt.s32.f32 %v264_v20  ;;  %v585_v19 = vld [vmem:[%s1020_s0 + $0xe0] sm:$0xff] }
  0x76   :  { %v454_v30 = vmul.f32 %v682_v21, %v682_v21  ;;  %v327_v31 = vmul.f32 0.03125, %v295_v23  ;;  %v391_v32 = vmul.f32 0.03125, %v231_v22  ;;  %v392_v18 = vmul.f32 0.03125, %v232_v24 }
  0x77   :  { %v517_v35 = vadd.f32 %v485_v27, %v453_v25  ;;  %v328_v37 = vmul.f32 0.03125, %v296_v29  ;;  %v169_v33 = vshra.s32 %v103_v8, 3  ;;  %v72_v38 = vmul.u32 128, %v946_v47 }
  0x78   :  { %v518_v34 = vadd.f32 %v486_v28, %v454_v30  ;;  %v683_v40 = vadd.f32 -1.0, %v327_v31  ;;  %v715_v41 = vadd.f32 -1.0, %v391_v32  ;;  %v716_v42 = vadd.f32 -1.0, %v392_v18 }
  0x79   :  { %vm549_vm8 = vcmp.le.f32.partialorder %v517_v35, 1.0  ;;  %v684_v43 = vadd.f32 -1.0, %v328_v37  ;;  %v201_v44 = vshra.s32 %v169_v33, 6  ;;  %v265_v45 = vand.u32 63, %v169_v33 }
  0x7a   :  { %v613_v46 = vsel %vm549_vm8, %v581_v36, 0.0  ;;  %vm550_vm9 = vcmp.le.f32.partialorder %v518_v34, 1.0  ;;  %v455_v48 = vmul.f32 %v683_v40, %v683_v40  ;;  %v487_v49 = vmul.f32 %v715_v41, %v715_v41 }
  0x7b   :  { %645 = vst [vmem:[%s1021_s1 + $0xc0] sm:$0xff] %v613_v46  ;;  %v614_v47 = vsel %vm550_vm9, %v582_v39, 0.0  ;;  %v456_v50 = vmul.f32 %v684_v43, %v684_v43  ;;  %v488_v51 = vmul.f32 %v716_v42, %v716_v42  ;;  %v233_v52 = vcvt.s32.f32 %v201_v44  ;;  %v586_v39 = vld [vmem:[%s1020_s0 + $0xe8] sm:$0xff] }
  0x7c   :  { %646 = vst [vmem:[%s1021_s1 + $0xc8] sm:$0xff] %v614_v47  ;;  %v519_v53 = vadd.f32 %v487_v49, %v455_v48  ;;  %v297_v57 = vcvt.s32.f32 %v265_v45  ;;  %v104_v58 = vadd.s32 %v72_v38, %v733_v2  ;;  %v73_v10 = vmul.u32 128, %v952_v54  ;;  %v587_v48 = vld [vmem:[%s1020_s0 + $0xf0] sm:$0xff]  ;;  %v588_v47 = vld [vmem:[%s1020_s0 + $0xf8] sm:$0xff] }
  0x7d   :  { %v520_v14 = vadd.f32 %v488_v51, %v456_v50  ;;  %v393_v59 = vmul.f32 0.03125, %v233_v52  ;;  %v74_v60 = vmul.u32 128, %v955_v55 }
  0x7e   :  { %vm551_vm10 = vcmp.le.f32.partialorder %v519_v53, 1.0  ;;  %v329_v61 = vmul.f32 0.03125, %v297_v57  ;;  %v170_v62 = vshra.s32 %v104_v58, 3  ;;  %v105_v63 = vadd.s32 %v73_v10, %v733_v2 }
  0x7f   :  { %v615_v0 = vsel %vm551_vm10, %v583_v56, 0.0  ;;  %vm552_vm11 = vcmp.le.f32.partialorder %v520_v14, 1.0  ;;  %v717_v1 = vadd.f32 -1.0, %v393_v59  ;;  %v106_v3 = vadd.s32 %v74_v60, %v733_v2 }
  0x80   :  { %647 = vst [vmem:[%s1021_s1 + $0xd0] sm:$0xff] %v615_v0  ;;  %v616_v54 = vsel %vm552_vm11, %v584_v26, 0.0  ;;  %v685_v17 = vadd.f32 -1.0, %v329_v61  ;;  %v202_v4 = vshra.s32 %v170_v62, 6  ;;  %v266_v5 = vand.u32 63, %v170_v62 }
  0x81   :  { %648 = vst [vmem:[%s1021_s1 + $0xd8] sm:$0xff] %v616_v54  ;;  %v489_v55 = vmul.f32 %v717_v1, %v717_v1  ;;  %v171_v6 = vshra.s32 %v105_v63, 3  ;;  %v172_v7 = vshra.s32 %v106_v3, 3 }
  0x82   :  { %v457_v8 = vmul.f32 %v685_v17, %v685_v17  ;;  %v234_v9 = vcvt.s32.f32 %v202_v4  ;;  %v298_v11 = vcvt.s32.f32 %v266_v5 }
  0x83   :  { %v203_v12 = vshra.s32 %v171_v6, 6  ;;  %v267_v2 = vand.u32 63, %v171_v6  ;;  %v204_v13 = vshra.s32 %v172_v7, 6  ;;  %v268_v15 = vand.u32 63, %v172_v7 }
  0x84   :  { %v521_v16 = vadd.f32 %v489_v55, %v457_v8  ;;  %v330_v20 = vmul.f32 0.03125, %v298_v11  ;;  %v394_v21 = vmul.f32 0.03125, %v234_v9 }
  0x85   :  { %v235_v22 = vcvt.s32.f32 %v203_v12  ;;  %v299_v23 = vcvt.s32.f32 %v267_v2  ;;  %v236_v24 = vcvt.s32.f32 %v204_v13  ;;  %v300_v25 = vcvt.s32.f32 %v268_v15 }
  0x86   :  { %vm553_vm12 = vcmp.le.f32.partialorder %v521_v16, 1.0  ;;  %v686_v27 = vadd.f32 -1.0, %v330_v20  ;;  %v718_v28 = vadd.f32 -1.0, %v394_v21 }
  0x87   :  { %v617_v29 = vsel %vm553_vm12, %v585_v19, 0.0  ;;  %v331_v30 = vmul.f32 0.03125, %v299_v23  ;;  %v395_v31 = vmul.f32 0.03125, %v235_v22  ;;  %v332_v32 = vmul.f32 0.03125, %v300_v25 }
  0x88   :  { %649 = vst [vmem:[%s1021_s1 + $0xe0] sm:$0xff] %v617_v29  ;;  %v458_v18 = vmul.f32 %v686_v27, %v686_v27  ;;  %v490_v35 = vmul.f32 %v718_v28, %v718_v28  ;;  %v396_v36 = vmul.f32 0.03125, %v236_v24 }
  0x89   :  { %v687_v37 = vadd.f32 -1.0, %v331_v30  ;;  %v719_v33 = vadd.f32 -1.0, %v395_v31  ;;  %v688_v38 = vadd.f32 -1.0, %v332_v32 }
  0x8a   :  { %v522_v34 = vadd.f32 %v490_v35, %v458_v18  ;;  %v720_v40 = vadd.f32 -1.0, %v396_v36 }
  0x8b   :  { %v459_v41 = vmul.f32 %v687_v37, %v687_v37  ;;  %v491_v42 = vmul.f32 %v719_v33, %v719_v33  ;;  %v460_v43 = vmul.f32 %v688_v38, %v688_v38 }
  0x8c   :  { %vm554_vm13 = vcmp.le.f32.partialorder %v522_v34, 1.0  ;;  %v492_v44 = vmul.f32 %v720_v40, %v720_v40 }
  0x8d   :  { %v618_v45 = vsel %vm554_vm13, %v586_v39, 0.0  ;;  %v523_v46 = vadd.f32 %v491_v42, %v459_v41 }
  0x8e   :  { %650 = vst [vmem:[%s1021_s1 + $0xe8] sm:$0xff] %v618_v45  ;;  %v524_v49 = vadd.f32 %v492_v44, %v460_v43 }
  0x8f   :  { %vm555_vm14 = vcmp.le.f32.partialorder %v523_v46, 1.0 }
  0x90   :  { %v619_v50 = vsel %vm555_vm14, %v587_v48, 0.0  ;;  %vm556_vm15 = vcmp.le.f32.partialorder %v524_v49, 1.0 }
  0x91   :  { %651 = vst [vmem:[%s1021_s1 + $0xf0] sm:$0xff] %v619_v50  ;;  %v620_v51 = vsel %vm556_vm15, %v588_v47, 0.0 }
  0x92   :  { %652 = vst [vmem:[%s1021_s1 + $0xf8] sm:$0xff] %v620_v51 }

// kernel: custom-call.2
= control target key start
LH: loop header
LB: loop body
LE: loop exit
PB: predicated region body
PF: predicated region fallthrough
CT: control target
= control target key end

     0   :  { %s812_s0 = inlined_call_operand.vmem [shape: f32[64,64,1,2,2], index: 0, kind: input, shape index: {}]   ;;  %s813_s2 = inlined_call_operand.vmem [shape: c64[64,64,1,2,2], index: 2, kind: output, shape index: {}]   ;;  %s814_s1 = inlined_call_operand.vmem [shape: f32[64,64,1,2,2], index: 1, kind: input, shape index: {}]  }
   0x1   :  { %v5_v0 = vld [vmem:[%s812_s0] sm:$0xff]  ;;  %v288_v1 = vld [vmem:[%s812_s0 + $0x8] sm:$0xff]  ;;  %v290_v2 = vld [vmem:[%s812_s0 + $0x10] sm:$0xff] }
   0x2   :  { %6 = vst [vmem:[%s813_s2] sm:$0xff] %v5_v0  ;;  %289 = vst [vmem:[%s813_s2 + $0x8] sm:$0xff] %v288_v1  ;;  %v292_v3 = vld [vmem:[%s812_s0 + $0x18] sm:$0xff]  ;;  %v294_v4 = vld [vmem:[%s812_s0 + $0x20] sm:$0xff] }
   0x3   :  { %291 = vst [vmem:[%s813_s2 + $0x10] sm:$0xff] %v290_v2  ;;  %v296_v5 = vld [vmem:[%s812_s0 + $0x28] sm:$0xff]  ;;  %293 = vst [vmem:[%s813_s2 + $0x18] sm:$0xff] %v292_v3  ;;  %v298_v6 = vld [vmem:[%s812_s0 + $0x30] sm:$0xff] }
   0x4   :  { %295 = vst [vmem:[%s813_s2 + $0x20] sm:$0xff] %v294_v4  ;;  %297 = vst [vmem:[%s813_s2 + $0x28] sm:$0xff] %v296_v5  ;;  %v300_v7 = vld [vmem:[%s812_s0 + $0x38] sm:$0xff]  ;;  %v302_v8 = vld [vmem:[%s812_s0 + $0x40] sm:$0xff] }
   0x5   :  { %299 = vst [vmem:[%s813_s2 + $0x30] sm:$0xff] %v298_v6  ;;  %301 = vst [vmem:[%s813_s2 + $0x38] sm:$0xff] %v300_v7  ;;  %v304_v9 = vld [vmem:[%s812_s0 + $0x48] sm:$0xff]  ;;  %v306_v10 = vld [vmem:[%s812_s0 + $0x50] sm:$0xff] }
   0x6   :  { %303 = vst [vmem:[%s813_s2 + $0x40] sm:$0xff] %v302_v8  ;;  %v308_v11 = vld [vmem:[%s812_s0 + $0x58] sm:$0xff]  ;;  %305 = vst [vmem:[%s813_s2 + $0x48] sm:$0xff] %v304_v9  ;;  %v310_v12 = vld [vmem:[%s812_s0 + $0x60] sm:$0xff] }
   0x7   :  { %307 = vst [vmem:[%s813_s2 + $0x50] sm:$0xff] %v306_v10  ;;  %309 = vst [vmem:[%s813_s2 + $0x58] sm:$0xff] %v308_v11  ;;  %v312_v13 = vld [vmem:[%s812_s0 + $0x68] sm:$0xff]  ;;  %v314_v14 = vld [vmem:[%s812_s0 + $0x70] sm:$0xff] }
   0x8   :  { %311 = vst [vmem:[%s813_s2 + $0x60] sm:$0xff] %v310_v12  ;;  %313 = vst [vmem:[%s813_s2 + $0x68] sm:$0xff] %v312_v13  ;;  %v316_v15 = vld [vmem:[%s812_s0 + $0x78] sm:$0xff]  ;;  %v318_v16 = vld [vmem:[%s812_s0 + $0x80] sm:$0xff] }
   0x9   :  { %315 = vst [vmem:[%s813_s2 + $0x70] sm:$0xff] %v314_v14  ;;  %v320_v17 = vld [vmem:[%s812_s0 + $0x88] sm:$0xff]  ;;  %317 = vst [vmem:[%s813_s2 + $0x78] sm:$0xff] %v316_v15  ;;  %v322_v18 = vld [vmem:[%s812_s0 + $0x90] sm:$0xff] }
   0xa   :  { %319 = vst [vmem:[%s813_s2 + $0x80] sm:$0xff] %v318_v16  ;;  %321 = vst [vmem:[%s813_s2 + $0x88] sm:$0xff] %v320_v17  ;;  %v324_v19 = vld [vmem:[%s812_s0 + $0x98] sm:$0xff]  ;;  %v326_v20 = vld [vmem:[%s812_s0 + $0xa0] sm:$0xff] }
   0xb   :  { %323 = vst [vmem:[%s813_s2 + $0x90] sm:$0xff] %v322_v18  ;;  %325 = vst [vmem:[%s813_s2 + $0x98] sm:$0xff] %v324_v19  ;;  %v328_v21 = vld [vmem:[%s812_s0 + $0xa8] sm:$0xff]  ;;  %v330_v22 = vld [vmem:[%s812_s0 + $0xb0] sm:$0xff] }
   0xc   :  { %327 = vst [vmem:[%s813_s2 + $0xa0] sm:$0xff] %v326_v20  ;;  %v332_v23 = vld [vmem:[%s812_s0 + $0xb8] sm:$0xff]  ;;  %329 = vst [vmem:[%s813_s2 + $0xa8] sm:$0xff] %v328_v21  ;;  %v334_v24 = vld [vmem:[%s812_s0 + $0xc0] sm:$0xff] }
   0xd   :  { %331 = vst [vmem:[%s813_s2 + $0xb0] sm:$0xff] %v330_v22  ;;  %333 = vst [vmem:[%s813_s2 + $0xb8] sm:$0xff] %v332_v23  ;;  %v336_v25 = vld [vmem:[%s812_s0 + $0xc8] sm:$0xff]  ;;  %v338_v26 = vld [vmem:[%s812_s0 + $0xd0] sm:$0xff] }
   0xe   :  { %335 = vst [vmem:[%s813_s2 + $0xc0] sm:$0xff] %v334_v24  ;;  %337 = vst [vmem:[%s813_s2 + $0xc8] sm:$0xff] %v336_v25  ;;  %v340_v27 = vld [vmem:[%s812_s0 + $0xd8] sm:$0xff]  ;;  %v342_v28 = vld [vmem:[%s812_s0 + $0xe0] sm:$0xff] }
   0xf   :  { %339 = vst [vmem:[%s813_s2 + $0xd0] sm:$0xff] %v338_v26  ;;  %v344_v29 = vld [vmem:[%s812_s0 + $0xe8] sm:$0xff]  ;;  %341 = vst [vmem:[%s813_s2 + $0xd8] sm:$0xff] %v340_v27  ;;  %v346_v30 = vld [vmem:[%s812_s0 + $0xf0] sm:$0xff] }
  0x10   :  { %343 = vst [vmem:[%s813_s2 + $0xe0] sm:$0xff] %v342_v28  ;;  %345 = vst [vmem:[%s813_s2 + $0xe8] sm:$0xff] %v344_v29  ;;  %v348_v31 = vld [vmem:[%s812_s0 + $0xf8] sm:$0xff]  ;;  %v131_v32 = vld [vmem:[%s814_s1] sm:$0xff] }
  0x11   :  { %347 = vst [vmem:[%s813_s2 + $0xf0] sm:$0xff] %v346_v30  ;;  %349 = vst [vmem:[%s813_s2 + $0xf8] sm:$0xff] %v348_v31  ;;  %v351_v33 = vld [vmem:[%s814_s1 + $0x8] sm:$0xff]  ;;  %v353_v34 = vld [vmem:[%s814_s1 + $0x10] sm:$0xff] }
  0x12   :  { %350 = vst [vmem:[%s813_s2 + $0x100] sm:$0xff] %v131_v32  ;;  %v355_v35 = vld [vmem:[%s814_s1 + $0x18] sm:$0xff]  ;;  %352 = vst [vmem:[%s813_s2 + $0x108] sm:$0xff] %v351_v33  ;;  %v357_v36 = vld [vmem:[%s814_s1 + $0x20] sm:$0xff] }
  0x13   :  { %354 = vst [vmem:[%s813_s2 + $0x110] sm:$0xff] %v353_v34  ;;  %356 = vst [vmem:[%s813_s2 + $0x118] sm:$0xff] %v355_v35  ;;  %v359_v37 = vld [vmem:[%s814_s1 + $0x28] sm:$0xff]  ;;  %v361_v38 = vld [vmem:[%s814_s1 + $0x30] sm:$0xff] }
  0x14   :  { %358 = vst [vmem:[%s813_s2 + $0x120] sm:$0xff] %v357_v36  ;;  %360 = vst [vmem:[%s813_s2 + $0x128] sm:$0xff] %v359_v37  ;;  %v363_v39 = vld [vmem:[%s814_s1 + $0x38] sm:$0xff]  ;;  %v365_v40 = vld [vmem:[%s814_s1 + $0x40] sm:$0xff] }
  0x15   :  { %362 = vst [vmem:[%s813_s2 + $0x130] sm:$0xff] %v361_v38  ;;  %v367_v41 = vld [vmem:[%s814_s1 + $0x48] sm:$0xff]  ;;  %364 = vst [vmem:[%s813_s2 + $0x138] sm:$0xff] %v363_v39  ;;  %v369_v42 = vld [vmem:[%s814_s1 + $0x50] sm:$0xff] }
  0x16   :  { %366 = vst [vmem:[%s813_s2 + $0x140] sm:$0xff] %v365_v40  ;;  %368 = vst [vmem:[%s813_s2 + $0x148] sm:$0xff] %v367_v41  ;;  %v371_v43 = vld [vmem:[%s814_s1 + $0x58] sm:$0xff]  ;;  %v373_v44 = vld [vmem:[%s814_s1 + $0x60] sm:$0xff] }
  0x17   :  { %370 = vst [vmem:[%s813_s2 + $0x150] sm:$0xff] %v369_v42  ;;  %372 = vst [vmem:[%s813_s2 + $0x158] sm:$0xff] %v371_v43  ;;  %v375_v45 = vld [vmem:[%s814_s1 + $0x68] sm:$0xff]  ;;  %v377_v46 = vld [vmem:[%s814_s1 + $0x70] sm:$0xff] }
  0x18   :  { %374 = vst [vmem:[%s813_s2 + $0x160] sm:$0xff] %v373_v44  ;;  %v379_v47 = vld [vmem:[%s814_s1 + $0x78] sm:$0xff]  ;;  %376 = vst [vmem:[%s813_s2 + $0x168] sm:$0xff] %v375_v45  ;;  %v381_v48 = vld [vmem:[%s814_s1 + $0x80] sm:$0xff] }
  0x19   :  { %378 = vst [vmem:[%s813_s2 + $0x170] sm:$0xff] %v377_v46  ;;  %380 = vst [vmem:[%s813_s2 + $0x178] sm:$0xff] %v379_v47  ;;  %v383_v49 = vld [vmem:[%s814_s1 + $0x88] sm:$0xff]  ;;  %v385_v50 = vld [vmem:[%s814_s1 + $0x90] sm:$0xff] }
  0x1a   :  { %382 = vst [vmem:[%s813_s2 + $0x180] sm:$0xff] %v381_v48  ;;  %384 = vst [vmem:[%s813_s2 + $0x188] sm:$0xff] %v383_v49  ;;  %v387_v51 = vld [vmem:[%s814_s1 + $0x98] sm:$0xff]  ;;  %v389_v52 = vld [vmem:[%s814_s1 + $0xa0] sm:$0xff] }
  0x1b   :  { %386 = vst [vmem:[%s813_s2 + $0x190] sm:$0xff] %v385_v50  ;;  %v391_v53 = vld [vmem:[%s814_s1 + $0xa8] sm:$0xff]  ;;  %388 = vst [vmem:[%s813_s2 + $0x198] sm:$0xff] %v387_v51  ;;  %v393_v54 = vld [vmem:[%s814_s1 + $0xb0] sm:$0xff] }
  0x1c   :  { %390 = vst [vmem:[%s813_s2 + $0x1a0] sm:$0xff] %v389_v52  ;;  %392 = vst [vmem:[%s813_s2 + $0x1a8] sm:$0xff] %v391_v53  ;;  %v395_v55 = vld [vmem:[%s814_s1 + $0xb8] sm:$0xff]  ;;  %v397_v56 = vld [vmem:[%s814_s1 + $0xc0] sm:$0xff] }
  0x1d   :  { %394 = vst [vmem:[%s813_s2 + $0x1b0] sm:$0xff] %v393_v54  ;;  %396 = vst [vmem:[%s813_s2 + $0x1b8] sm:$0xff] %v395_v55  ;;  %v399_v57 = vld [vmem:[%s814_s1 + $0xc8] sm:$0xff]  ;;  %v401_v58 = vld [vmem:[%s814_s1 + $0xd0] sm:$0xff] }
  0x1e   :  { %398 = vst [vmem:[%s813_s2 + $0x1c0] sm:$0xff] %v397_v56  ;;  %v403_v59 = vld [vmem:[%s814_s1 + $0xd8] sm:$0xff]  ;;  %400 = vst [vmem:[%s813_s2 + $0x1c8] sm:$0xff] %v399_v57  ;;  %v405_v60 = vld [vmem:[%s814_s1 + $0xe0] sm:$0xff] }
  0x1f   :  { %402 = vst [vmem:[%s813_s2 + $0x1d0] sm:$0xff] %v401_v58  ;;  %404 = vst [vmem:[%s813_s2 + $0x1d8] sm:$0xff] %v403_v59  ;;  %v407_v61 = vld [vmem:[%s814_s1 + $0xe8] sm:$0xff]  ;;  %v409_v62 = vld [vmem:[%s814_s1 + $0xf0] sm:$0xff] }
  0x20   :  { %406 = vst [vmem:[%s813_s2 + $0x1e0] sm:$0xff] %v405_v60  ;;  %408 = vst [vmem:[%s813_s2 + $0x1e8] sm:$0xff] %v407_v61  ;;  %v411_v63 = vld [vmem:[%s814_s1 + $0xf8] sm:$0xff] }
  0x21   :  { %410 = vst [vmem:[%s813_s2 + $0x1f0] sm:$0xff] %v409_v62  ;;  %412 = vst [vmem:[%s813_s2 + $0x1f8] sm:$0xff] %v411_v63 }

</bundles_post_ra>
